<compile_context>
chip_gen: v5e
topology: v5e:2x2
jax: 0.10.0
libtpu: 0.0.40
codegen_flags: <defaults>
</compile_context>

<pallas_src>
import jax
import jax.numpy as jnp
from jax.experimental import pallas as pl
from jax.experimental.pallas import tpu as pltpu


def _gap_conv_kernel(x_ref, w_ref, b_ref, o_ref):
    # x_ref: (Cin, HW)   one sample, native NCHW-derived layout (no transpose)
    # w_ref: (Cout, Cin) native PyTorch weight layout (no transpose)
    # b_ref: (Cout, 1)
    # o_ref: (Cout, 1)
    hw = x_ref.shape[-1]  # logical HW extent (lane padding is masked/zero)

    # MXU matmul first: (Cout, Cin) @ (Cin, HW) -> (Cout, HW).
    # W is LHS with K=Cin on lanes, X is RHS with K on sublanes: canonical
    # MXU layout for both, no XLU relayout on the critical path.
    y = jnp.dot(
        w_ref[...].astype(jnp.float32),
        x_ref[...].astype(jnp.float32),
        preferred_element_type=jnp.float32,
    )                                                            # (Cout, HW)

    # Tiny lane reduce (~9 vregs), then the compile-time 1/HW mean scale and
    # the bias add; result is already (Cout, 1) oriented for the store.
    s = jnp.sum(y, axis=-1, keepdims=True) * (1.0 / hw)          # (Cout, 1)
    o_ref[...] = (s + b_ref[...].astype(jnp.float32)).astype(o_ref.dtype)


def mean_conv2d(x_nchw, weight, bias):
    """x_nchw: (N, Cin, H, W); weight: (Cout, Cin, 1, 1); bias: (Cout,).
    Returns (N, Cout, 1, 1), matching the PyTorch module."""
    N, Cin, H, W = x_nchw.shape
    Cout = weight.shape[0]
    HW = H * W

    # Free reshapes only (no data movement / no extra HBM passes).
    x_flat = x_nchw.reshape(N, Cin, HW)        # (N, Cin, HW)
    w2 = weight.reshape(Cout, Cin)             # (Cout, Cin) native layout
    b2 = bias.reshape(Cout, 1)                 # (Cout, 1)

    out = pl.pallas_call(
        _gap_conv_kernel,
        out_shape=jax.ShapeDtypeStruct((N, Cout, 1), x_nchw.dtype),
        grid_spec=pltpu.PrefetchScalarGridSpec(
            num_scalar_prefetch=0,
            grid=(N,),
            in_specs=[
                # One sample per step; leading batch dim squeezed out of the
                # kernel view. Trailing dims are full-extent -> legal blocks.
                pl.BlockSpec((None, Cin, HW), lambda n: (n, 0, 0)),
                # Weight / bias: constant block index -> DMA'd once.
                pl.BlockSpec((Cout, Cin), lambda n: (0, 0)),
                pl.BlockSpec((Cout, 1), lambda n: (0, 0)),
            ],
            out_specs=pl.BlockSpec((None, Cout, 1), lambda n: (n, 0, 0)),
        ),
        compiler_params=pltpu.CompilerParams(
            dimension_semantics=("parallel",),
        ),
    )(x_flat, w2, b2)

    # (N, Cout, 1) -> (N, Cout, 1, 1): free reshape (same contiguous layout).
    return out.reshape(N, Cout, 1, 1)


if __name__ == "__main__":
    # Shapes implied by the module: input (1, 1632, 7, 7), Conv2d 1632 -> 68.
    N, Cin, H, W = 1, 1632, 7, 7
    Cout = 68

    key = jax.random.PRNGKey(0)
    kx, kw, kb = jax.random.split(key, 3)

    x = jax.random.normal(kx, (N, Cin, H, W), dtype=jnp.float32)
    weight = jax.random.normal(kw, (Cout, Cin, 1, 1), dtype=jnp.float32) * 0.02
    bias = jax.random.normal(kb, (Cout,), dtype=jnp.float32) * 0.02

    y = jax.block_until_ready(mean_conv2d(x, weight, bias))

    # Pure-JAX reference check.
    ref = (
        jnp.einsum("nc,oc->no", jnp.mean(x, axis=(2, 3)), weight.reshape(Cout, Cin))
        + bias
    ).reshape(N, Cout, 1, 1)
    assert y.shape == (N, Cout, 1, 1)
    assert jnp.allclose(y, ref, atol=1e-4, rtol=1e-4), float(jnp.max(jnp.abs(y - ref)))

    print("KERNEL_OK")
</pallas_src>

<mosaic_0001>
module attributes {stable_mosaic.version = 11 : i64} {
  func.func @_gap_conv_kernel(%arg0: i32, %arg1: memref<1x1632x49xf32, #tpu.memory_space<vmem>>, %arg2: memref<68x1632xf32, #tpu.memory_space<vmem>>, %arg3: memref<68x1xf32, #tpu.memory_space<vmem>>, %arg4: memref<1x68x1xf32, #tpu.memory_space<vmem>>) attributes {dimension_semantics = [#tpu.dimension_semantics<parallel>], iteration_bounds = array<i64: 1>, scalar_prefetch = 0 : i64, scratch_operands = 0 : i64, tpu.core_type = #tpu.core_type<tc>, window_params = [{transform_indices = @transform_0, window_bounds = array<i64: 1, 1632, 49>}, {pipeline_mode = #tpu.pipeline_mode<synchronous>, transform_indices = @transform_1, window_bounds = array<i64: 68, 1632>}, {pipeline_mode = #tpu.pipeline_mode<synchronous>, transform_indices = @transform_2, window_bounds = array<i64: 68, 1>}, {transform_indices = @transform_3, window_bounds = array<i64: 1, 68, 1>}]} {
    %c0 = arith.constant 0 : index
    %c0_0 = arith.constant 0 : index
    %0 = vector.load %arg2[%c0, %c0_0] : memref<68x1632xf32, #tpu.memory_space<vmem>>, vector<68x1632xf32>
    %c0_1 = arith.constant 0 : index
    %c0_2 = arith.constant 0 : index
    %c0_3 = arith.constant 0 : index
    %1 = vector.load %arg1[%c0_1, %c0_2, %c0_3] : memref<1x1632x49xf32, #tpu.memory_space<vmem>>, vector<1x1632x49xf32>
    %2 = vector.shape_cast %1 : vector<1x1632x49xf32> to vector<1632x49xf32>
    %cst = arith.constant dense<0.000000e+00> : vector<68x49xf32>
    %3 = tpu.matmul %0, %2, %cst {dimension_numbers = #tpu.dot_dimension_numbers<[1], [0], [0], [1], [0, 0, 1, 1], [], []>} : vector<68x1632xf32>, vector<1632x49xf32>, vector<68x49xf32> -> vector<68x49xf32>
    %cst_4 = arith.constant dense<0.000000e+00> : vector<68xf32>
    %4 = vector.multi_reduction <add>, %3, %cst_4 [1] : vector<68x49xf32> to vector<68xf32>
    %5 = vector.shape_cast %4 : vector<68xf32> to vector<68x1xf32>
    %cst_5 = arith.constant 0.0204081628 : f32
    %6 = vector.broadcast %cst_5 : f32 to vector<68x1xf32>
    %7 = arith.mulf %5, %6 : vector<68x1xf32>
    %c0_6 = arith.constant 0 : index
    %c0_7 = arith.constant 0 : index
    %8 = vector.load %arg3[%c0_6, %c0_7] : memref<68x1xf32, #tpu.memory_space<vmem>>, vector<68x1xf32>
    %9 = arith.addf %7, %8 : vector<68x1xf32>
    %c0_8 = arith.constant 0 : index
    %c0_9 = arith.constant 0 : index
    %c0_10 = arith.constant 0 : index
    %10 = vector.load %arg4[%c0_8, %c0_9, %c0_10] : memref<1x68x1xf32, #tpu.memory_space<vmem>>, vector<1x68x1xf32>
    %11 = vector.shape_cast %10 : vector<1x68x1xf32> to vector<68x1xf32>
    %12 = vector.shape_cast %9 : vector<68x1xf32> to vector<1x68x1xf32>
    tpu.vector_store %arg4[%c0_8, %c0_9, %c0_10], %12 {strides = array<i32>} : memref<1x68x1xf32, #tpu.memory_space<vmem>>, vector<1x68x1xf32>,
    return
  }
  func.func @transform_0(%arg0: i32) -> (i32, i32, i32) {
    %c0_i32 = arith.constant 0 : i32
    %c0_i32_0 = arith.constant 0 : i32
    %c0_i32_1 = arith.constant 0 : i32
    return %arg0, %c0_i32, %c0_i32_0 : i32, i32, i32
  }
  func.func @transform_1(%arg0: i32) -> (i32, i32) {
    %c0_i32 = arith.constant 0 : i32
    %c0_i32_0 = arith.constant 0 : i32
    %c0_i32_1 = arith.constant 0 : i32
    return %c0_i32, %c0_i32_0 : i32, i32
  }
  func.func @transform_2(%arg0: i32) -> (i32, i32) {
    %c0_i32 = arith.constant 0 : i32
    %c0_i32_0 = arith.constant 0 : i32
    %c0_i32_1 = arith.constant 0 : i32
    return %c0_i32, %c0_i32_0 : i32, i32
  }
  func.func @transform_3(%arg0: i32) -> (i32, i32, i32) {
    %c0_i32 = arith.constant 0 : i32
    %c0_i32_0 = arith.constant 0 : i32
    %c0_i32_1 = arith.constant 0 : i32
    return %arg0, %c0_i32, %c0_i32_0 : i32, i32, i32
  }
}

</mosaic_0001>

<bundles_post_ra>
// kernel: tpu_custom_call.1
= control target key start
LH: loop header
LB: loop body
LE: loop exit
PB: predicated region body
PF: predicated region fallthrough
CT: control target
= control target key end

     0   :  { %vm335_vm0 = vcmask 785408   ;;  %vm935_vm1 = vcmask 400384   ;;  %vm960_vm2 = vcmask 396288   ;;  %vm991_vm3 = vcmask 7168   ;;  %s2231_s0 = inlined_call_operand.vmem [shape: f32[1,1632,49], index: 0, kind: input, shape index: {}]   ;;  %s2232_s1 = inlined_call_operand.vmem [shape: f32[68,1632], index: 1, kind: input, shape index: {}]   ;;  %s2233_s2 = inlined_call_operand.vmem [shape: f32[68,1], index: 2, kind: input, shape index: {}]   ;;  %s2234_s3 = inlined_call_operand.vmem [shape: f32[1,68,1], index: 3, kind: output, shape index: {}]  }
   0x1   :  { %v146_v0 = vld [vmem:[%s2231_s0 + $0x78] sm:$0xff]  ;;  %v145_v1 = vld [vmem:[%s2231_s0 + $0x70] sm:$0xff]  ;;  %v144_v2 = vld [vmem:[%s2231_s0 + $0x68] sm:$0xff]  ;;  %vm1000_vm4 = vcmask 3072  }
   0x2   :  { %1015 = vmatpush.msra.mxu1 %v146_v0  ;;  %1016 = vmatpush.msra.mxu2 %v146_v0  ;;  %v143_v3 = vld [vmem:[%s2231_s0 + $0x60] sm:$0xff]  ;;  %v194_v4 = vld [vmem:[%s2231_s0 + $0x1f8] sm:$0xff]  ;;  %v193_v5 = vld [vmem:[%s2231_s0 + $0x1f0] sm:$0xff] }
   0x3   :  { %363 = vmatpush.msra.mxu0 %v146_v0  ;;  %v142_v6 = vld [vmem:[%s2231_s0 + $0x58] sm:$0xff]  ;;  %495 = vmatpush.msra.mxu3 %v194_v4  ;;  %v192_v7 = vld [vmem:[%s2231_s0 + $0x1e8] sm:$0xff]  ;;  %v141_v8 = vld [vmem:[%s2231_s0 + $0x50] sm:$0xff] }
   0x4   :  { %1017 = vmatpush.msra.mxu1 %v145_v1  ;;  %1018 = vmatpush.msra.mxu2 %v145_v1  ;;  %v191_v9 = vld [vmem:[%s2231_s0 + $0x1e0] sm:$0xff]  ;;  %v140_v10 = vld [vmem:[%s2231_s0 + $0x48] sm:$0xff]  ;;  %v190_v11 = vld [vmem:[%s2231_s0 + $0x1d8] sm:$0xff] }
   0x5   :  { %364 = vmatpush.msra.mxu0 %v145_v1  ;;  %496 = vmatpush.msra.mxu3 %v193_v5  ;;  %v139_v12 = vld [vmem:[%s2231_s0 + $0x40] sm:$0xff]  ;;  %v189_v13 = vld [vmem:[%s2231_s0 + $0x1d0] sm:$0xff]  ;;  %v138_v14 = vld [vmem:[%s2231_s0 + $0x38] sm:$0xff] }
   0x6   :  { %1019 = vmatpush.msra.mxu1 %v144_v2  ;;  %1020 = vmatpush.msra.mxu2 %v144_v2  ;;  %v188_v15 = vld [vmem:[%s2231_s0 + $0x1c8] sm:$0xff]  ;;  %v137_v16 = vld [vmem:[%s2231_s0 + $0x30] sm:$0xff]  ;;  %v187_v17 = vld [vmem:[%s2231_s0 + $0x1c0] sm:$0xff] }
   0x7   :  { %365 = vmatpush.msra.mxu0 %v144_v2  ;;  %497 = vmatpush.msra.mxu3 %v192_v7  ;;  %v136_v18 = vld [vmem:[%s2231_s0 + $0x28] sm:$0xff]  ;;  %v186_v19 = vld [vmem:[%s2231_s0 + $0x1b8] sm:$0xff]  ;;  %v135_v20 = vld [vmem:[%s2231_s0 + $0x20] sm:$0xff] }
   0x8   :  { %1021 = vmatpush.msra.mxu1 %v143_v3  ;;  %1022 = vmatpush.msra.mxu2 %v143_v3  ;;  %v185_v21 = vld [vmem:[%s2231_s0 + $0x1b0] sm:$0xff]  ;;  %v134_v22 = vld [vmem:[%s2231_s0 + $0x18] sm:$0xff]  ;;  %v184_v23 = vld [vmem:[%s2231_s0 + $0x1a8] sm:$0xff] }
   0x9   :  { %366 = vmatpush.msra.mxu0 %v143_v3  ;;  %498 = vmatpush.msra.mxu3 %v191_v9  ;;  %v133_v24 = vld [vmem:[%s2231_s0 + $0x10] sm:$0xff]  ;;  %v183_v25 = vld [vmem:[%s2231_s0 + $0x1a0] sm:$0xff]  ;;  %v132_v26 = vld [vmem:[%s2231_s0 + $0x8] sm:$0xff] }
   0xa   :  { %1023 = vmatpush.msra.mxu1 %v142_v6  ;;  %1024 = vmatpush.msra.mxu2 %v142_v6  ;;  %v182_v27 = vld [vmem:[%s2231_s0 + $0x198] sm:$0xff]  ;;  %v131_v28 = vld [vmem:[%s2231_s0] sm:$0xff]  ;;  %v177_v32 = vld [vmem:[%s2231_s0 + $0x170] sm:$0xff] }
   0xb   :  { %367 = vmatpush.msra.mxu0 %v142_v6  ;;  %499 = vmatpush.msra.mxu3 %v190_v11  ;;  %v66_v29 = vld [vmem:[%s2232_s1 + $0x1a0] sm:$0xff]  ;;  %v178_v30 = vld [vmem:[%s2231_s0 + $0x178] sm:$0xff]  ;;  %v161_v34 = vld [vmem:[%s2231_s0 + $0xf0] sm:$0xff] }
   0xc   :  { %1025 = vmatpush.msra.mxu1 %v141_v8  ;;  %1026 = vmatpush.msra.mxu2 %v141_v8  ;;  %v162_v31 = vld [vmem:[%s2231_s0 + $0xf8] sm:$0xff]  ;;  %v14_v33 = vld [vmem:[%s2232_s1] sm:$0xff]  ;;  %v176_v36 = vld [vmem:[%s2231_s0 + $0x168] sm:$0xff] }
   0xd   :  { %368 = vmatpush.msra.mxu0 %v141_v8  ;;  %500 = vmatpush.msra.mxu3 %v189_v13  ;;  %v210_v35 = vld [vmem:[%s2231_s0 + $0x278] sm:$0xff]  ;;  %v181_v37 = vld [vmem:[%s2231_s0 + $0x190] sm:$0xff]  ;;  %v160_v38 = vld [vmem:[%s2231_s0 + $0xe8] sm:$0xff] }
   0xe   :  { %1027 = vmatpush.msra.mxu1 %v140_v10  ;;  %1028 = vmatpush.msra.mxu2 %v140_v10  ;;  %v209_v39 = vld [vmem:[%s2231_s0 + $0x270] sm:$0xff]  ;;  %v175_v40 = vld [vmem:[%s2231_s0 + $0x160] sm:$0xff]  ;;  %v180_v41 = vld [vmem:[%s2231_s0 + $0x188] sm:$0xff] }
   0xf   :  { %369 = vmatpush.msra.mxu0 %v140_v10  ;;  %501 = vmatpush.msra.mxu3 %v188_v15  ;;  %v159_v42 = vld [vmem:[%s2231_s0 + $0xe0] sm:$0xff]  ;;  %v208_v43 = vld [vmem:[%s2231_s0 + $0x268] sm:$0xff]  ;;  %v174_v45 = vld [vmem:[%s2231_s0 + $0x158] sm:$0xff] }
  0x10   :  { %1029 = vmatpush.msra.mxu1 %v139_v12  ;;  %1030 = vmatpush.msra.mxu2 %v139_v12  ;;  %v79_v44 = vld [vmem:[%s2232_s1 + $0x208] sm:$0xff]  ;;  %v158_v46 = vld [vmem:[%s2231_s0 + $0xd8] sm:$0xff]  ;;  %v207_v47 = vld [vmem:[%s2231_s0 + $0x260] sm:$0xff] }
  0x11   :  { %370 = vmatpush.msra.mxu0 %v139_v12  ;;  %502 = vmatpush.msra.mxu3 %v187_v17  ;;  %v173_v48 = vld [vmem:[%s2231_s0 + $0x150] sm:$0xff]  ;;  %v27_v49 = vld [vmem:[%s2232_s1 + $0x68] sm:$0xff]  ;;  %v206_v51 = vld [vmem:[%s2231_s0 + $0x258] sm:$0xff] }
  0x12   :  { %1031 = vmatpush.msra.mxu1 %v138_v14  ;;  %1032 = vmatpush.msra.mxu2 %v138_v14  ;;  %v157_v50 = vld [vmem:[%s2231_s0 + $0xd0] sm:$0xff]  ;;  %v172_v52 = vld [vmem:[%s2231_s0 + $0x148] sm:$0xff]  ;;  %v179_v53 = vld [vmem:[%s2231_s0 + $0x180] sm:$0xff] }
  0x13   :  { %371 = vmatpush.msra.mxu0 %v138_v14  ;;  %503 = vmatpush.msra.mxu3 %v186_v19  ;;  %v156_v54 = vld [vmem:[%s2231_s0 + $0xc8] sm:$0xff]  ;;  %v205_v55 = vld [vmem:[%s2231_s0 + $0x250] sm:$0xff]  ;;  %v171_v56 = vld [vmem:[%s2231_s0 + $0x140] sm:$0xff] }
  0x14   :  { %1033 = vmatpush.msra.mxu1 %v137_v16  ;;  %1034 = vmatpush.msra.mxu2 %v137_v16  ;;  %v17_v57 = vld [vmem:[%s2232_s1 + $0x18] sm:$0xff]  ;;  %v155_v58 = vld [vmem:[%s2231_s0 + $0xc0] sm:$0xff]  ;;  %v204_v59 = vld [vmem:[%s2231_s0 + $0x248] sm:$0xff] }
  0x15   :  { %372 = vmatpush.msra.mxu0 %v137_v16  ;;  %504 = vmatpush.msra.mxu3 %v185_v21  ;;  %v92_v60 = vld [vmem:[%s2232_s1 + $0x270] sm:$0xff]  ;;  %v170_v61 = vld [vmem:[%s2231_s0 + $0x138] sm:$0xff]  ;;  %v118_v63 = vld [vmem:[%s2232_s1 + $0x340] sm:$0xf] }
  0x16   :  { %1035 = vmatpush.msra.mxu1 %v136_v18  ;;  %1036 = vmatpush.msra.mxu2 %v136_v18  ;;  %v154_v62 = vld [vmem:[%s2231_s0 + $0xb8] sm:$0xff]  ;;  %v169_v0 = vld [vmem:[%s2231_s0 + $0x130] sm:$0xff]  ;;  %v203_v1 = vld [vmem:[%s2231_s0 + $0x240] sm:$0xff] }
  0x17   :  { %373 = vmatpush.msra.mxu0 %v136_v18  ;;  %505 = vmatpush.msra.mxu3 %v184_v23  ;;  %v153_v2 = vld [vmem:[%s2231_s0 + $0xb0] sm:$0xff]  ;;  %v168_v4 = vld [vmem:[%s2231_s0 + $0x128] sm:$0xff]  ;;  %v202_v5 = vld [vmem:[%s2231_s0 + $0x238] sm:$0xff] }
  0x18   :  { %1037 = vmatpush.msra.mxu1 %v135_v20  ;;  %1038 = vmatpush.msra.mxu2 %v135_v20  ;;  %v40_v3 = vld [vmem:[%s2232_s1 + $0xd0] sm:$0xff]  ;;  %v152_v6 = vld [vmem:[%s2231_s0 + $0xa8] sm:$0xff]  ;;  %v258_v7 = vld [vmem:[%s2231_s0 + $0x3f8] sm:$0xff] }
  0x19   :  { %374 = vmatpush.msra.mxu0 %v135_v20  ;;  %506 = vmatpush.msra.mxu3 %v183_v25  ;;  %v167_v8 = vld [vmem:[%s2231_s0 + $0x120] sm:$0xff]  ;;  %v201_v9 = vld [vmem:[%s2231_s0 + $0x230] sm:$0xff]  ;;  %v105_v12 = vld [vmem:[%s2232_s1 + $0x2d8] sm:$0xff] }
  0x1a   :  { %1039 = vmatpush.msra.mxu1 %v134_v22  ;;  %1040 = vmatpush.msra.mxu2 %v134_v22  ;;  %v151_v10 = vld [vmem:[%s2231_s0 + $0xa0] sm:$0xff]  ;;  %v257_v11 = vld [vmem:[%s2231_s0 + $0x3f0] sm:$0xff]  ;;  %v166_v13 = vld [vmem:[%s2231_s0 + $0x118] sm:$0xff] }
  0x1b   :  { %375 = vmatpush.msra.mxu0 %v134_v22  ;;  %507 = vmatpush.msra.mxu3 %v182_v27  ;;  %v150_v14 = vld [vmem:[%s2231_s0 + $0x98] sm:$0xff]  ;;  %v200_v15 = vld [vmem:[%s2231_s0 + $0x228] sm:$0xff]  ;;  %v165_v16 = vld [vmem:[%s2231_s0 + $0x110] sm:$0xff] }
  0x1c   :  { %1041 = vmatpush.msra.mxu1 %v133_v24  ;;  %1042 = vmatpush.msra.mxu2 %v133_v24  ;;  %v30_v17 = vld [vmem:[%s2232_s1 + $0x80] sm:$0xff]  ;;  %v149_v18 = vld [vmem:[%s2231_s0 + $0x90] sm:$0xff]  ;;  %v164_v20 = vld [vmem:[%s2231_s0 + $0x108] sm:$0xff] }
  0x1d   :  { %376 = vmatpush.msra.mxu0 %v133_v24  ;;  %508 = vmatpush.msra.mxu3 %v181_v37  ;;  %v199_v19 = vld [vmem:[%s2231_s0 + $0x220] sm:$0xff]  ;;  %v53_v21 = vld [vmem:[%s2232_s1 + $0x138] sm:$0xff]  ;;  %v148_v22 = vld [vmem:[%s2231_s0 + $0x88] sm:$0xff] }
  0x1e   :  { %1043 = vmatpush.msra.mxu1 %v132_v26  ;;  %1044 = vmatpush.msra.mxu2 %v132_v26  ;;  %v198_v23 = vld [vmem:[%s2231_s0 + $0x218] sm:$0xff]  ;;  %v163_v24 = vld [vmem:[%s2231_s0 + $0x100] sm:$0xff]  ;;  %v256_v25 = vld [vmem:[%s2231_s0 + $0x3e8] sm:$0xff] }
  0x1f   :  { %377 = vmatpush.msra.mxu0 %v132_v26  ;;  %509 = vmatpush.msra.mxu3 %v180_v41  ;;  %v147_v26 = vld [vmem:[%s2231_s0 + $0x80] sm:$0xff]  ;;  %v16_v27 = vld [vmem:[%s2232_s1 + $0x10] sm:$0xff]  ;;  %v43_v37 = vld [vmem:[%s2232_s1 + $0xe8] sm:$0xff] }
  0x20   :  { %1045 = vmatpush.msra.mxu1 %v131_v28  ;;  %1046 = vmatpush.msra.mxu2 %v131_v28  ;;  %v239_v41 = vld [vmem:[%s2231_s0 + $0x360] sm:$0xff] }
  0x21   :  { %391 = vmatmul.f32.vlgmr.msra.gmra.mxu1 %v66_v29  ;;  %378 = vmatpush.msra.mxu0 %v131_v28  ;;  %v242_v28 = vld [vmem:[%s2231_s0 + $0x378] sm:$0xff]  ;;  %v15_v29 = vld [vmem:[%s2232_s1 + $0x8] sm:$0xff] }
  0x22   :  { %451 = vmatpush.msrb.mxu2 %v178_v30  ;;  %407 = vmatpush.msrb.mxu1 %v162_v31  ;;  %v226_v30 = vld [vmem:[%s2231_s0 + $0x2f8] sm:$0xff]  ;;  %v197_v31 = vld [vmem:[%s2231_s0 + $0x210] sm:$0xff] }
  0x23   :  { %379 = vmatmul.f32.vlgmr.msra.gmra.mxu0 %v14_v33  ;;  %510 = vmatpush.msra.mxu3 %v179_v53  ;;  %v255_v33 = vld [vmem:[%s2231_s0 + $0x3e0] sm:$0xff]  ;;  %v236_v53 = vld [vmem:[%s2231_s0 + $0x348] sm:$0xff] }
  0x24   :  { %452 = vmatpush.msrb.mxu2 %v177_v32  ;;  %408 = vmatpush.msrb.mxu1 %v161_v34  ;;  %v241_v32 = vld [vmem:[%s2231_s0 + $0x370] sm:$0xff]  ;;  %v196_v34 = vld [vmem:[%s2231_s0 + $0x208] sm:$0xff] }
  0x25   :  { %539 = vmatpush.msrb.mxu0 %v210_v35  ;;  %511 = vmatmul.f32.vlgmr.msra.gmra.mxu3 %v17_v57  ;;  %v225_v35 = vld [vmem:[%s2231_s0 + $0x2f0] sm:$0xff]  ;;  %v235_v57 = vld [vmem:[%s2231_s0 + $0x340] sm:$0xff] }
  0x26   :  { %453 = vmatpush.msrb.mxu2 %v176_v36  ;;  %409 = vmatpush.msrb.mxu1 %v160_v38  ;;  %v240_v36 = vld [vmem:[%s2231_s0 + $0x368] sm:$0xff]  ;;  %v195_v38 = vld [vmem:[%s2231_s0 + $0x200] sm:$0xff] }
  0x27   :  { %540 = vmatpush.msrb.mxu0 %v209_v39  ;;  %403 = vmatmul.f32.vlgmr.msra.gmra.mxu2 %v118_v63  ;;  %v224_v39 = vld [vmem:[%s2231_s0 + $0x2e8] sm:$0xff]  ;;  %v271_v63 = vld [vmem:[%s2231_s0 + $0x460] sm:$0xff] }
  0x28   :  { %454 = vmatpush.msrb.mxu2 %v175_v40  ;;  %410 = vmatpush.msrb.mxu1 %v159_v42  ;;  %v18_v40 = vld [vmem:[%s2232_s1 + $0x20] sm:$0xff]  ;;  %v29_v42 = vld [vmem:[%s2232_s1 + $0x78] sm:$0xff] }
  0x29   :  { %541 = vmatpush.msrb.mxu0 %v208_v43  ;;  %394 = vmatmul.f32.gmra.mxu1 %v79_v44  ;;  %v254_v43 = vld [vmem:[%s2231_s0 + $0x3d8] sm:$0xff]  ;;  %v28_v44 = vld [vmem:[%s2232_s1 + $0x70] sm:$0xff] }
  0x2a   :  { %455 = vmatpush.msrb.mxu2 %v174_v45  ;;  %411 = vmatpush.msrb.mxu1 %v158_v46  ;;  %v238_v45 = vld [vmem:[%s2231_s0 + $0x358] sm:$0xff]  ;;  %v223_v46 = vld [vmem:[%s2231_s0 + $0x2e0] sm:$0xff] }
  0x2b   :  { %542 = vmatpush.msrb.mxu0 %v207_v47  ;;  %671 = vmatpush.msrb.mxu3 %v258_v7  ;;  %v274_v47 = vld [vmem:[%s2231_s0 + $0x478] sm:$0xff] }
  0x2c   :  { %456 = vmatpush.msrb.mxu2 %v173_v48  ;;  %382 = vmatmul.f32.gmra.mxu0 %v27_v49  ;;  %v253_v48 = vld [vmem:[%s2231_s0 + $0x3d0] sm:$0xff]  ;;  %v218_v7 = vld [vmem:[%s2231_s0 + $0x2b8] sm:$0xff] }
  0x2d   :  { %412 = vmatpush.msrb.mxu1 %v157_v50  ;;  %543 = vmatpush.msrb.mxu0 %v206_v51  ;;  %v237_v49 = vld [vmem:[%s2231_s0 + $0x350] sm:$0xff]  ;;  %v222_v50 = vld [vmem:[%s2231_s0 + $0x2d8] sm:$0xff] }
  0x2e   :  { %457 = vmatpush.msrb.mxu2 %v172_v52  ;;  %672 = vmatpush.msrb.mxu3 %v257_v11  ;;  %v273_v51 = vld [vmem:[%s2231_s0 + $0x470] sm:$0xff]  ;;  %v248_v11 = vld [vmem:[%s2231_s0 + $0x3a8] sm:$0xff] }
  0x2f   :  { %413 = vmatpush.msrb.mxu1 %v156_v54  ;;  %544 = vmatpush.msrb.mxu0 %v205_v55  ;;  %v56_v52 = vld [vmem:[%s2232_s1 + $0x150] sm:$0xff]  ;;  %v252_v54 = vld [vmem:[%s2231_s0 + $0x3c8] sm:$0xff] }
  0x30   :  { %458 = vmatpush.msrb.mxu2 %v171_v56  ;;  %514 = vmatmul.f32.gmra.mxu3 %v30_v17  ;;  %v221_v55 = vld [vmem:[%s2231_s0 + $0x2d0] sm:$0xff]  ;;  %v31_v56 = vld [vmem:[%s2232_s1 + $0x88] sm:$0xff]  ;;  %v231_v17 = vld [vmem:[%s2231_s0 + $0x320] sm:$0xff] }
  0x31   :  { %414 = vmatpush.msrb.mxu1 %v155_v58  ;;  %545 = vmatpush.msrb.mxu0 %v204_v59  ;;  %v42_v58 = vld [vmem:[%s2232_s1 + $0xe0] sm:$0xff]  ;;  %v272_v59 = vld [vmem:[%s2231_s0 + $0x468] sm:$0xff] }
  0x32   :  { %397 = vmatmul.f32.gmra.mxu1 %v92_v60  ;;  %459 = vmatpush.msrb.mxu2 %v170_v61  ;;  %v41_v60 = vld [vmem:[%s2232_s1 + $0xd8] sm:$0xff]  ;;  %v251_v61 = vld [vmem:[%s2231_s0 + $0x3c0] sm:$0xff] }
  0x33   :  { %415 = vmatpush.msrb.mxu1 %v154_v62  ;;  %546 = vmatpush.msrb.mxu0 %v203_v1  ;;  %v220_v62 = vld [vmem:[%s2231_s0 + $0x2c8] sm:$0xff]  ;;  %v234_v1 = vld [vmem:[%s2231_s0 + $0x338] sm:$0xff] }
  0x34   :  { %460 = vmatpush.msrb.mxu2 %v169_v0  ;;  %385 = vmatmul.f32.gmra.mxu0 %v40_v3  ;;  %v250_v0 = vld [vmem:[%s2231_s0 + $0x3b8] sm:$0xff] }
  0x35   :  { %416 = vmatpush.msrb.mxu1 %v153_v2  ;;  %547 = vmatpush.msrb.mxu0 %v202_v5  ;;  %v219_v2 = vld [vmem:[%s2231_s0 + $0x2c0] sm:$0xff]  ;;  %v270_v3 = vld [vmem:[%s2231_s0 + $0x458] sm:$0xff]  ;;  %v233_v5 = vld [vmem:[%s2231_s0 + $0x330] sm:$0xff] }
  0x36   :  { %461 = vmatpush.msrb.mxu2 %v168_v4  ;;  %673 = vmatpush.msrb.mxu3 %v256_v25  ;;  %v69_v4 = vld [vmem:[%s2232_s1 + $0x1b8] sm:$0xff]  ;;  %v245_v25 = vld [vmem:[%s2231_s0 + $0x390] sm:$0xff] }
  0x37   :  { %417 = vmatpush.msrb.mxu1 %v152_v6  ;;  %548 = vmatpush.msrb.mxu0 %v201_v9  ;;  %v249_v6 = vld [vmem:[%s2231_s0 + $0x3b0] sm:$0xff]  ;;  %v232_v9 = vld [vmem:[%s2231_s0 + $0x328] sm:$0xff] }
  0x38   :  { %462 = vmatpush.msrb.mxu2 %v167_v8  ;;  %674 = vmatpush.msrb.mxu3 %v255_v33  ;;  %v44_v8 = vld [vmem:[%s2232_s1 + $0xf0] sm:$0xff]  ;;  %v228_v33 = vld [vmem:[%s2231_s0 + $0x308] sm:$0xff] }
  0x39   :  { %418 = vmatpush.msrb.mxu1 %v151_v10  ;;  %549 = vmatpush.msrb.mxu0 %v200_v15  ;;  %v55_v10 = vld [vmem:[%s2232_s1 + $0x148] sm:$0xff]  ;;  %v247_v15 = vld [vmem:[%s2231_s0 + $0x3a0] sm:$0xff] }
  0x3a   :  { %400 = vmatmul.f32.gmra.mxu1 %v105_v12  ;;  %463 = vmatpush.msrb.mxu2 %v166_v13  ;;  %v54_v12 = vld [vmem:[%s2232_s1 + $0x140] sm:$0xff]  ;;  %v269_v13 = vld [vmem:[%s2231_s0 + $0x450] sm:$0xff] }
  0x3b   :  { %419 = vmatpush.msrb.mxu1 %v150_v14  ;;  %550 = vmatpush.msrb.mxu0 %v199_v19  ;;  %v217_v14 = vld [vmem:[%s2231_s0 + $0x2b0] sm:$0xff]  ;;  %v246_v19 = vld [vmem:[%s2231_s0 + $0x398] sm:$0xff] }
  0x3c   :  { %464 = vmatpush.msrb.mxu2 %v165_v16  ;;  %388 = vmatmul.f32.gmra.mxu0 %v53_v21  ;;  %v268_v16 = vld [vmem:[%s2231_s0 + $0x448] sm:$0xff]  ;;  %v267_v21 = vld [vmem:[%s2231_s0 + $0x440] sm:$0xff] }
  0x3d   :  { %420 = vmatpush.msrb.mxu1 %v149_v18  ;;  %551 = vmatpush.msrb.mxu0 %v198_v23  ;;  %v216_v18 = vld [vmem:[%s2231_s0 + $0x2a8] sm:$0xff]  ;;  %v230_v23 = vld [vmem:[%s2231_s0 + $0x318] sm:$0xff] }
  0x3e   :  { %465 = vmatpush.msrb.mxu2 %v164_v20  ;;  %517 = vmatmul.f32.gmra.mxu3 %v43_v37  ;;  %v82_v20 = vld [vmem:[%s2232_s1 + $0x220] sm:$0xff]  ;;  %v264_v37 = vld [vmem:[%s2231_s0 + $0x428] sm:$0xff] }
  0x3f   :  { %421 = vmatpush.msrb.mxu1 %v148_v22  ;;  %552 = vmatpush.msrb.mxu0 %v197_v31  ;;  %v215_v22 = vld [vmem:[%s2231_s0 + $0x2a0] sm:$0xff]  ;;  %v244_v31 = vld [vmem:[%s2231_s0 + $0x388] sm:$0xff] }
  0x40   :  { %466 = vmatpush.msrb.mxu2 %v163_v24  ;;  %675 = vmatpush.msrb.mxu3 %v254_v43  ;;  %v57_v24 = vld [vmem:[%s2232_s1 + $0x158] sm:$0xff]  ;;  %v263_v43 = vld [vmem:[%s2231_s0 + $0x420] sm:$0xff] }
  0x41   :  { %422 = vmatpush.msrb.mxu1 %v147_v26  ;;  %467 = vmatmul.f32.vlgmr.msrb.gmra.mxu2 %v16_v27  ;;  %v68_v26 = vld [vmem:[%s2232_s1 + $0x1b0] sm:$0xff]  ;;  %v266_v27 = vld [vmem:[%s2231_s0 + $0x438] sm:$0xff] }
  0x42   :  { %627 = vmatpush.msra.mxu2 %v242_v28  ;;  %423 = vmatmul.f32.vlgmr.msrb.gmra.mxu1 %v15_v29  ;;  %v67_v28 = vld [vmem:[%s2232_s1 + $0x1a8] sm:$0xff]  ;;  %v229_v29 = vld [vmem:[%s2231_s0 + $0x310] sm:$0xff] }
  0x43   :  { %583 = vmatpush.msra.mxu1 %v226_v30  ;;  %553 = vmatpush.msrb.mxu0 %v196_v34  ;;  %v214_v30 = vld [vmem:[%s2231_s0 + $0x298] sm:$0xff]  ;;  %v213_v34 = vld [vmem:[%s2231_s0 + $0x290] sm:$0xff] }
  0x44   :  { %628 = vmatpush.msra.mxu2 %v241_v32  ;;  %676 = vmatpush.msrb.mxu3 %v253_v48  ;;  %v265_v32 = vld [vmem:[%s2231_s0 + $0x430] sm:$0xff] }
  0x45   :  { %584 = vmatpush.msra.mxu1 %v225_v35  ;;  %554 = vmatpush.msrb.mxu0 %v195_v38  ;;  %v243_v35 = vld [vmem:[%s2231_s0 + $0x380] sm:$0xff]  ;;  %v212_v38 = vld [vmem:[%s2231_s0 + $0x288] sm:$0xff]  ;;  %v108_v48 = vld [vmem:[%s2232_s1 + $0x2f0] sm:$0xff] }
  0x46   :  { %629 = vmatpush.msra.mxu2 %v240_v36  ;;  %555 = vmatmul.f32.vlgmr.msrb.gmra.mxu0 %v18_v40  ;;  %v95_v36 = vld [vmem:[%s2232_s1 + $0x288] sm:$0xff]  ;;  %v70_v40 = vld [vmem:[%s2232_s1 + $0x1c0] sm:$0xff] }
  0x47   :  { %585 = vmatpush.msra.mxu1 %v224_v39  ;;  %715 = vmatpush.msra.mxu0 %v274_v47  ;;  %v227_v39 = vld [vmem:[%s2231_s0 + $0x300] sm:$0xff]  ;;  %v306_v47 = vld [vmem:[%s2231_s0 + $0x578] sm:$0xff] }
  0x48   :  { %630 = vmatpush.msra.mxu2 %v239_v41  ;;  %520 = vmatmul.f32.gmra.mxu3 %v56_v52  ;;  %v322_v41 = vld [vmem:[%s2231_s0 + $0x5f8] sm:$0xff]  ;;  %v305_v52 = vld [vmem:[%s2231_s0 + $0x570] sm:$0xff] }
  0x49   :  { %470 = vmatmul.f32.gmra.mxu2 %v29_v42  ;;  %586 = vmatpush.msra.mxu1 %v223_v46  ;;  %v81_v42 = vld [vmem:[%s2232_s1 + $0x218] sm:$0xff] }
  0x4a   :  { %426 = vmatmul.f32.gmra.mxu1 %v28_v44  ;;  %631 = vmatpush.msra.mxu2 %v238_v45  ;;  %v80_v44 = vld [vmem:[%s2232_s1 + $0x210] sm:$0xff]  ;;  %v211_v45 = vld [vmem:[%s2231_s0 + $0x280] sm:$0xff]  ;;  %v262_v46 = vld [vmem:[%s2231_s0 + $0x418] sm:$0xff] }
  0x4b   :  { %587 = vmatpush.msra.mxu1 %v222_v50  ;;  %716 = vmatpush.msra.mxu0 %v273_v51  ;;  %v290_v50 = vld [vmem:[%s2231_s0 + $0x4f8] sm:$0xff]  ;;  %v261_v51 = vld [vmem:[%s2231_s0 + $0x410] sm:$0xff] }
  0x4c   :  { %632 = vmatpush.msra.mxu2 %v237_v49  ;;  %677 = vmatpush.msrb.mxu3 %v252_v54  ;;  %v321_v49 = vld [vmem:[%s2231_s0 + $0x5f0] sm:$0xff]  ;;  %v260_v54 = vld [vmem:[%s2231_s0 + $0x408] sm:$0xff] }
  0x4d   :  { %588 = vmatpush.msra.mxu1 %v221_v55  ;;  %717 = vmatpush.msra.mxu0 %v272_v59  ;;  %v83_v55 = vld [vmem:[%s2232_s1 + $0x228] sm:$0xff]  ;;  %v289_v59 = vld [vmem:[%s2231_s0 + $0x4f0] sm:$0xff] }
  0x4e   :  { %633 = vmatpush.msra.mxu2 %v236_v53  ;;  %558 = vmatmul.f32.gmra.mxu0 %v31_v56  ;;  %v320_v53 = vld [vmem:[%s2231_s0 + $0x5e8] sm:$0xff]  ;;  %v94_v56 = vld [vmem:[%s2232_s1 + $0x280] sm:$0xff] }
  0x4f   :  { %678 = vmatpush.msrb.mxu3 %v251_v61  ;;  %589 = vmatpush.msra.mxu1 %v220_v62  ;;  %v121_v61 = vld [vmem:[%s2232_s1 + $0x358] sm:$0xf]  ;;  %v319_v62 = vld [vmem:[%s2231_s0 + $0x5e0] sm:$0xff] }
  0x50   :  { %634 = vmatpush.msra.mxu2 %v235_v57  ;;  %718 = vmatpush.msra.mxu0 %v271_v63  ;;  %v93_v57 = vld [vmem:[%s2232_s1 + $0x278] sm:$0xff]  ;;  %v288_v63 = vld [vmem:[%s2231_s0 + $0x4e8] sm:$0xff] }
  0x51   :  { %473 = vmatmul.f32.gmra.mxu2 %v42_v58  ;;  %679 = vmatpush.msrb.mxu3 %v250_v0  ;;  %v259_v58 = vld [vmem:[%s2231_s0 + $0x400] sm:$0xff] }
  0x52   :  { %429 = vmatmul.f32.gmra.mxu1 %v41_v60  ;;  %635 = vmatpush.msra.mxu2 %v234_v1  ;;  %v304_v60 = vld [vmem:[%s2231_s0 + $0x568] sm:$0xff]  ;;  %v303_v0 = vld [vmem:[%s2231_s0 + $0x560] sm:$0xff]  ;;  %v318_v1 = vld [vmem:[%s2231_s0 + $0x5d8] sm:$0xff] }
  0x53   :  { %590 = vmatpush.msra.mxu1 %v219_v2  ;;  %719 = vmatpush.msra.mxu0 %v270_v3  ;;  %v96_v2 = vld [vmem:[%s2232_s1 + $0x290] sm:$0xff]  ;;  %v107_v3 = vld [vmem:[%s2232_s1 + $0x2e8] sm:$0xff] }
  0x54   :  { %523 = vmatmul.f32.gmra.mxu3 %v69_v4  ;;  %636 = vmatpush.msra.mxu2 %v233_v5  ;;  %v106_v4 = vld [vmem:[%s2232_s1 + $0x2e0] sm:$0xff] }
  0x55   :  { %680 = vmatpush.msrb.mxu3 %v249_v6  ;;  %591 = vmatpush.msra.mxu1 %v218_v7  ;;  %v287_v5 = vld [vmem:[%s2231_s0 + $0x4e0] sm:$0xff]  ;;  %v302_v6 = vld [vmem:[%s2231_s0 + $0x558] sm:$0xff] }
  0x56   :  { %561 = vmatmul.f32.gmra.mxu0 %v44_v8  ;;  %637 = vmatpush.msra.mxu2 %v232_v9  ;;  %v21_v7 = vld [vmem:[%s2232_s1 + $0x38] sm:$0xff]  ;;  %v317_v9 = vld [vmem:[%s2231_s0 + $0x5d0] sm:$0xff] }
  0x57   :  { %681 = vmatpush.msrb.mxu3 %v248_v11  ;;  %720 = vmatpush.msra.mxu0 %v269_v13  ;;  %v1682_v8 = vld [vmem:[%s2231_s0 + $0x658] sm:$0xff]  ;;  %v120_v11 = vld [vmem:[%s2232_s1 + $0x350] sm:$0xf] }
  0x58   :  { %592 = vmatpush.msra.mxu1 %v217_v14  ;;  %638 = vmatpush.msra.mxu2 %v231_v17  ;;  %v286_v13 = vld [vmem:[%s2231_s0 + $0x4d8] sm:$0xff]  ;;  %v301_v14 = vld [vmem:[%s2231_s0 + $0x550] sm:$0xff] }
  0x59   :  { %476 = vmatmul.f32.gmra.mxu2 %v55_v10  ;;  %682 = vmatpush.msrb.mxu3 %v247_v15  ;;  %v109_v10 = vld [vmem:[%s2232_s1 + $0x2f8] sm:$0xff]  ;;  %v316_v15 = vld [vmem:[%s2231_s0 + $0x5c8] sm:$0xff]  ;;  %v285_v17 = vld [vmem:[%s2231_s0 + $0x4d0] sm:$0xff] }
  0x5a   :  { %432 = vmatmul.f32.gmra.mxu1 %v54_v12  ;;  %721 = vmatpush.msra.mxu0 %v268_v16  ;;  %v119_v12 = vld [vmem:[%s2232_s1 + $0x348] sm:$0xf]  ;;  %v1709_v16 = vld [vmem:[%s2231_s0 + $0x650] sm:$0xff] }
  0x5b   :  { %593 = vmatpush.msra.mxu1 %v216_v18  ;;  %683 = vmatpush.msrb.mxu3 %v246_v19  ;;  %v300_v18 = vld [vmem:[%s2231_s0 + $0x548] sm:$0xff]  ;;  %v34_v19 = vld [vmem:[%s2232_s1 + $0xa0] sm:$0xff] }
  0x5c   :  { %526 = vmatmul.f32.gmra.mxu3 %v82_v20  ;;  %722 = vmatpush.msra.mxu0 %v267_v21  ;;  %v315_v20 = vld [vmem:[%s2231_s0 + $0x5c0] sm:$0xff] }
  0x5d   :  { %594 = vmatpush.msra.mxu1 %v215_v22  ;;  %639 = vmatpush.msra.mxu2 %v230_v23  ;;  %v122_v21 = vld [vmem:[%s2232_s1 + $0x360] sm:$0xf]  ;;  %v20_v22 = vld [vmem:[%s2232_s1 + $0x30] sm:$0xff]  ;;  %v19_v23 = vld [vmem:[%s2232_s1 + $0x28] sm:$0xff] }
  0x5e   :  { %564 = vmatmul.f32.gmra.mxu0 %v57_v24  ;;  %684 = vmatpush.msrb.mxu3 %v245_v25  ;;  %v1736_v24 = vld [vmem:[%s2231_s0 + $0x648] sm:$0xff] }
  0x5f   :  { %723 = vmatpush.msra.mxu0 %v266_v27  ;;  %640 = vmatpush.msra.mxu2 %v229_v29  ;;  %v284_v25 = vld [vmem:[%s2231_s0 + $0x4c8] sm:$0xff]  ;;  %v314_v27 = vld [vmem:[%s2231_s0 + $0x5b8] sm:$0xff]  ;;  %v283_v29 = vld [vmem:[%s2231_s0 + $0x4c0] sm:$0xff] }
  0x60   :  { %595 = vmatpush.msra.mxu1 %v214_v30  ;;  %685 = vmatpush.msrb.mxu3 %v244_v31  ;;  %v298_v30 = vld [vmem:[%s2231_s0 + $0x538] sm:$0xff]  ;;  %v1760_v31 = vld [vmem:[%s2231_s0 + $0x640] sm:$0xff] }
  0x61   :  { %479 = vmatmul.f32.gmra.mxu2 %v68_v26  ;;  %724 = vmatpush.msra.mxu0 %v265_v32  ;;  %v299_v26 = vld [vmem:[%s2231_s0 + $0x540] sm:$0xff]  ;;  %v313_v32 = vld [vmem:[%s2231_s0 + $0x5b0] sm:$0xff] }
  0x62   :  { %435 = vmatmul.f32.gmra.mxu1 %v67_v28  ;;  %641 = vmatpush.msra.mxu2 %v228_v33  ;;  %v47_v28 = vld [vmem:[%s2232_s1 + $0x108] sm:$0xff]  ;;  %v22_v33 = vld [vmem:[%s2232_s1 + $0x40] sm:$0xff] }
  0x63   :  { %596 = vmatpush.msra.mxu1 %v213_v34  ;;  %686 = vmatpush.msrb.mxu3 %v243_v35  ;;  %v33_v34 = vld [vmem:[%s2232_s1 + $0x98] sm:$0xff]  ;;  %v32_v35 = vld [vmem:[%s2232_s1 + $0x90] sm:$0xff] }
  0x64   :  { %529 = vmatmul.f32.gmra.mxu3 %v95_v36  ;;  %725 = vmatpush.msra.mxu0 %v264_v37  ;;  %v282_v36 = vld [vmem:[%s2231_s0 + $0x4b8] sm:$0xff]  ;;  %v297_v37 = vld [vmem:[%s2231_s0 + $0x530] sm:$0xff] }
  0x65   :  { %597 = vmatpush.msra.mxu1 %v212_v38  ;;  %642 = vmatpush.msra.mxu2 %v227_v39  ;;  %v312_v38 = vld [vmem:[%s2231_s0 + $0x5a8] sm:$0xff]  ;;  %v60_v39 = vld [vmem:[%s2232_s1 + $0x170] sm:$0xff] }
  0x66   :  { %567 = vmatmul.f32.gmra.mxu0 %v70_v40  ;;  %847 = vmatpush.msra.mxu3 %v322_v41  ;;  %v1790_v40 = vld [vmem:[%s2231_s0 + $0x638] sm:$0xff]  ;;  %v281_v41 = vld [vmem:[%s2231_s0 + $0x4b0] sm:$0xff] }
  0x67   :  { %726 = vmatpush.msra.mxu0 %v263_v43  ;;  %803 = vmatpush.msrb.mxu2 %v306_v47  ;;  %v35_v43 = vld [vmem:[%s2232_s1 + $0xa8] sm:$0xff]  ;;  %v1814_v47 = vld [vmem:[%s2231_s0 + $0x630] sm:$0xff] }
  0x68   :  { %598 = vmatpush.msra.mxu1 %v211_v45  ;;  %848 = vmatpush.msra.mxu3 %v321_v49  ;;  %v45_v45 = vld [vmem:[%s2232_s1 + $0xf8] sm:$0xff]  ;;  %v295_v49 = vld [vmem:[%s2231_s0 + $0x520] sm:$0xff] }
  0x69   :  { %482 = vmatmul.f32.gmra.mxu2 %v81_v42  ;;  %727 = vmatpush.msra.mxu0 %v262_v46  ;;  %v296_v42 = vld [vmem:[%s2231_s0 + $0x528] sm:$0xff]  ;;  %v311_v46 = vld [vmem:[%s2231_s0 + $0x5a0] sm:$0xff] }
  0x6a   :  { %438 = vmatmul.f32.gmra.mxu1 %v80_v44  ;;  %804 = vmatpush.msrb.mxu2 %v305_v52  ;;  %v46_v44 = vld [vmem:[%s2232_s1 + $0x100] sm:$0xff]  ;;  %v48_v52 = vld [vmem:[%s2232_s1 + $0x110] sm:$0xff] }
  0x6b   :  { %759 = vmatpush.msrb.mxu1 %v290_v50  ;;  %728 = vmatpush.msra.mxu0 %v261_v51  ;;  %v73_v50 = vld [vmem:[%s2232_s1 + $0x1d8] sm:$0xff] }
  0x6c   :  { %532 = vmatmul.f32.gmra.mxu3 %v108_v48  ;;  %805 = vmatpush.msrb.mxu2 %v304_v60  ;;  %v280_v48 = vld [vmem:[%s2231_s0 + $0x4a8] sm:$0xff]  ;;  %v310_v51 = vld [vmem:[%s2231_s0 + $0x598] sm:$0xff]  ;;  %v309_v60 = vld [vmem:[%s2231_s0 + $0x590] sm:$0xff] }
  0x6d   :  { %849 = vmatpush.msra.mxu3 %v320_v53  ;;  %729 = vmatpush.msra.mxu0 %v260_v54  ;;  %v59_v53 = vld [vmem:[%s2232_s1 + $0x168] sm:$0xff] }
  0x6e   :  { %570 = vmatmul.f32.gmra.mxu0 %v83_v55  ;;  %760 = vmatpush.msrb.mxu1 %v289_v59  ;;  %v58_v55 = vld [vmem:[%s2232_s1 + $0x160] sm:$0xff] }
  0x6f   :  { %730 = vmatpush.msra.mxu0 %v259_v58  ;;  %850 = vmatpush.msra.mxu3 %v319_v62  ;;  %v1849_v58 = vld [vmem:[%s2231_s0 + $0x628] sm:$0xff]  ;;  %v86_v62 = vld [vmem:[%s2232_s1 + $0x240] sm:$0xff] }
  0x70   :  { %761 = vmatpush.msrb.mxu1 %v288_v63  ;;  %806 = vmatpush.msrb.mxu2 %v303_v0  ;;  %v61_v63 = vld [vmem:[%s2232_s1 + $0x178] sm:$0xff]  ;;  %v293_v0 = vld [vmem:[%s2231_s0 + $0x510] sm:$0xff] }
  0x71   :  { %485 = vmatmul.f32.gmra.mxu2 %v94_v56  ;;  %851 = vmatpush.msra.mxu3 %v318_v1  ;;  %v279_v56 = vld [vmem:[%s2231_s0 + $0x4a0] sm:$0xff]  ;;  %v308_v1 = vld [vmem:[%s2231_s0 + $0x588] sm:$0xff] }
  0x72   :  { %441 = vmatmul.f32.gmra.mxu1 %v93_v57  ;;  %807 = vmatpush.msrb.mxu2 %v302_v6  ;;  %v294_v57 = vld [vmem:[%s2231_s0 + $0x518] sm:$0xff] }
  0x73   :  { %762 = vmatpush.msrb.mxu1 %v287_v5  ;;  %895 = vmatpush.msrb.mxu0 %v1682_v8  ;;  %v71_v5 = vld [vmem:[%s2232_s1 + $0x1c8] sm:$0xff] }
  0x74   :  { %535 = vmatmul.f32.gmra.mxu3 %v121_v61  ;;  %808 = vmatpush.msrb.mxu2 %v301_v14  ;;  %v278_v61 = vld [vmem:[%s2231_s0 + $0x498] sm:$0xff]  ;;  %v276_v14 = vld [vmem:[%s2231_s0 + $0x488] sm:$0xff] }
  0x75   :  { %852 = vmatpush.msra.mxu3 %v317_v9  ;;  %763 = vmatpush.msrb.mxu1 %v286_v13  ;;  %v292_v9 = vld [vmem:[%s2231_s0 + $0x508] sm:$0xff]  ;;  %v74_v13 = vld [vmem:[%s2232_s1 + $0x1e0] sm:$0xff] }
  0x76   :  { %573 = vmatmul.f32.gmra.mxu0 %v96_v2  ;;  %809 = vmatpush.msrb.mxu2 %v300_v18  ;;  %v1875_v2 = vld [vmem:[%s2231_s0 + $0x620] sm:$0xff] }
  0x77   :  { %853 = vmatpush.msra.mxu3 %v316_v15  ;;  %896 = vmatpush.msrb.mxu0 %v1709_v16  ;;  %v291_v15 = vld [vmem:[%s2231_s0 + $0x500] sm:$0xff] }
  0x78   :  { %764 = vmatpush.msrb.mxu1 %v285_v17  ;;  %810 = vmatpush.msrb.mxu2 %v299_v26  ;;  %v85_v17 = vld [vmem:[%s2232_s1 + $0x238] sm:$0xff] }
  0x79   :  { %488 = vmatmul.f32.gmra.mxu2 %v107_v3  ;;  %854 = vmatpush.msra.mxu3 %v315_v20  ;;  %v72_v3 = vld [vmem:[%s2232_s1 + $0x1d0] sm:$0xff] }
  0x7a   :  { %444 = vmatmul.f32.gmra.mxu1 %v106_v4  ;;  %897 = vmatpush.msrb.mxu0 %v1736_v24  ;;  %v325_v20 = vld [vmem:[%s2231_s0 + $0x610] sm:$0xff] }
  0x7b   :  { %765 = vmatpush.msrb.mxu1 %v284_v25  ;;  %855 = vmatpush.msra.mxu3 %v314_v27  ;;  %v98_v25 = vld [vmem:[%s2232_s1 + $0x2a0] sm:$0xff]  ;;  %v97_v27 = vld [vmem:[%s2232_s1 + $0x298] sm:$0xff] }
  0x7c   :  { %687 = vmatmul.f32.vlgmr.msrb.gmra.mxu3 %v21_v7  ;;  %811 = vmatpush.msrb.mxu2 %v298_v30  ;;  %v277_v7 = vld [vmem:[%s2231_s0 + $0x490] sm:$0xff] }
  0x7d   :  { %766 = vmatpush.msrb.mxu1 %v283_v29  ;;  %898 = vmatpush.msrb.mxu0 %v1760_v31 }
  0x7e   :  { %576 = vmatmul.f32.gmra.mxu0 %v109_v10  ;;  %856 = vmatpush.msra.mxu3 %v313_v32  ;;  %v307_v10 = vld [vmem:[%s2231_s0 + $0x580] sm:$0xff]  ;;  %v100_v32 = vld [vmem:[%s2232_s1 + $0x2b0] sm:$0xff] }
  0x7f   :  { %767 = vmatpush.msrb.mxu1 %v282_v36  ;;  %812 = vmatpush.msrb.mxu2 %v297_v37 }
  0x80   :  { %857 = vmatpush.msra.mxu3 %v312_v38  ;;  %899 = vmatpush.msrb.mxu0 %v1790_v40  ;;  %v25_v38 = vld [vmem:[%s2232_s1 + $0x58] sm:$0xff] }
  0x81   :  { %491 = vmatmul.f32.gmra.mxu2 %v120_v11  ;;  %768 = vmatpush.msrb.mxu1 %v281_v41  ;;  %v326_v11 = vld [vmem:[%s2231_s0 + $0x618] sm:$0xff] }
  0x82   :  { %447 = vmatmul.f32.gmra.mxu1 %v119_v12  ;;  %813 = vmatpush.msrb.mxu2 %v296_v42  ;;  %v99_v12 = vld [vmem:[%s2232_s1 + $0x2a8] sm:$0xff]  ;;  %v113_v42 = vld [vmem:[%s2232_s1 + $0x318] sm:$0xff] }
  0x83   :  { %858 = vmatpush.msra.mxu3 %v311_v46  ;;  %900 = vmatpush.msrb.mxu0 %v1814_v47  ;;  %v123_v46 = vld [vmem:[%s2232_s1 + $0x368] sm:$0xf] }
  0x84   :  { %690 = vmatmul.f32.gmra.mxu3 %v34_v19  ;;  %769 = vmatpush.msrb.mxu1 %v280_v48  ;;  %v275_v19 = vld [vmem:[%s2231_s0 + $0x480] sm:$0xff] }
  0x85   :  { %814 = vmatpush.msrb.mxu2 %v295_v49  ;;  %859 = vmatpush.msra.mxu3 %v310_v51 }
  0x86   :  { %579 = vmatmul.f32.gmra.mxu0 %v122_v21  ;;  %770 = vmatpush.msrb.mxu1 %v279_v56  ;;  %v24_v56 = vld [vmem:[%s2232_s1 + $0x50] sm:$0xff] }
  0x87   :  { %815 = vmatpush.msrb.mxu2 %v294_v57  ;;  %901 = vmatpush.msrb.mxu0 %v1849_v58 }
  0x88   :  { %860 = vmatpush.msra.mxu3 %v309_v60  ;;  %771 = vmatpush.msrb.mxu1 %v278_v61 }
  0x89   :  { %643 = vmatmul.f32.vlgmr.msra.gmra.mxu2 %v20_v22  ;;  %902 = vmatpush.msrb.mxu0 %v1875_v2  ;;  %v112_v22 = vld [vmem:[%s2232_s1 + $0x310] sm:$0xff] }
  0x8a   :  { %599 = vmatmul.f32.vlgmr.msra.gmra.mxu1 %v19_v23  ;;  %816 = vmatpush.msrb.mxu2 %v293_v0 }
  0x8b   :  { %861 = vmatpush.msra.mxu3 %v308_v1  ;;  %772 = vmatpush.msrb.mxu1 %v277_v7 }
  0x8c   :  { %693 = vmatmul.f32.gmra.mxu3 %v47_v28  ;;  %817 = vmatpush.msrb.mxu2 %v292_v9  ;;  %v323_v28 = vld [vmem:[%s2231_s0 + $0x600] sm:$0xff]  ;;  %v36_v9 = vld [vmem:[%s2232_s1 + $0xb0] sm:$0xff] }
  0x8d   :  { %862 = vmatpush.msra.mxu3 %v307_v10  ;;  %903 = vmatpush.msrb.mxu0 %v326_v11 }
  0x8e   :  { %731 = vmatmul.f32.vlgmr.msra.gmra.mxu0 %v22_v33  ;;  %773 = vmatpush.msrb.mxu1 %v276_v14  ;;  %v111_v33 = vld [vmem:[%s2232_s1 + $0x308] sm:$0xff] }
  0x8f   :  { %1047 = vmatpush.msrb.mxu3 %v1682_v8  ;;  %v84_v8 = vld [vmem:[%s2232_s1 + $0x230] sm:$0xff]  ;;  %818 = vmatpush.msrb.mxu2 %v291_v15 }
  0x90   :  { %774 = vmatpush.msrb.mxu1 %v275_v19  ;;  %904 = vmatpush.msrb.mxu0 %v325_v20  ;;  %v50_v19 = vld [vmem:[%s2232_s1 + $0x120] sm:$0xff] }
  0x91   :  { %646 = vmatmul.f32.gmra.mxu2 %v33_v34  ;;  %1048 = vmatpush.msrb.mxu3 %v1709_v16  ;;  %v87_v16 = vld [vmem:[%s2232_s1 + $0x248] sm:$0xff] }
  0x92   :  { %602 = vmatmul.f32.gmra.mxu1 %v32_v35  ;;  %v110_v35 = vld [vmem:[%s2232_s1 + $0x300] sm:$0xff] }
  0x93   :  { %1049 = vmatpush.msrb.mxu3 %v1736_v24  ;;  %v324_v24 = vld [vmem:[%s2231_s0 + $0x608] sm:$0xff] }
  0x94   :  { %696 = vmatmul.f32.gmra.mxu3 %v60_v39  ;;  %905 = vmatpush.msrb.mxu0 %v324_v24 }
  0x95   :  { %1050 = vmatpush.msrb.mxu3 %v1760_v31  ;;  %v125_v31 = vld [vmem:[%s2232_s1 + $0x378] sm:$0xf] }
  0x96   :  { %734 = vmatmul.f32.gmra.mxu0 %v35_v43  ;;  %v124_v43 = vld [vmem:[%s2232_s1 + $0x370] sm:$0xf] }
  0x97   :  { %1051 = vmatpush.msrb.mxu3 %v1790_v40  ;;  %906 = vmatpush.msrb.mxu0 %v323_v28 }
  0x99   :  { %649 = vmatmul.f32.gmra.mxu2 %v46_v44  ;;  %1052 = vmatpush.msrb.mxu3 %v1814_v47 }
  0x9a   :  { %605 = vmatmul.f32.gmra.mxu1 %v45_v45 }
  0x9b   :  { %1053 = vmatpush.msrb.mxu3 %v1849_v58 }
  0x9c   :  { %699 = vmatmul.f32.gmra.mxu3 %v73_v50  ;;  %v38_v50 = vld [vmem:[%s2232_s1 + $0xc0] sm:$0xff] }
  0x9d   :  { %1054 = vmatpush.msrb.mxu3 %v1875_v2 }
  0x9e   :  { %v1835_v54 = vpop.f32.mrf.mxu1  ;;  %737 = vmatmul.f32.gmra.mxu0 %v48_v52 }
  0x9f   :  { %1055 = vmatpush.msrb.mxu3 %v326_v11 }
  0xa0   :  { %v1851_v59 = vpop.f32.mrf.mxu0 }
  0xa1   :  { %652 = vmatmul.f32.gmra.mxu2 %v59_v53  ;;  %1056 = vmatpush.msrb.mxu3 %v325_v20 }
  0xa2   :  { %608 = vmatmul.f32.gmra.mxu1 %v58_v55  ;;  %v126_v55 = vld [vmem:[%s2232_s1 + $0x380] sm:$0xf] }
  0xa3   :  { %1057 = vmatpush.msrb.mxu3 %v324_v24 }
  0xa4   :  { %702 = vmatmul.f32.gmra.mxu3 %v86_v62 }
  0xa5   :  { %1058 = vmatpush.msrb.mxu3 %v323_v28 }
  0xa6   :  { %v1880_v4 = vpop.f32.mrf.mxu1  ;;  %740 = vmatmul.f32.gmra.mxu0 %v61_v63  ;;  %v51_v63 = vld [vmem:[%s2232_s1 + $0x128] sm:$0xff] }
  0xa8   :  { %v512_v23 = vpop.f32.mrf.mxu3 }
  0xa9   :  { %655 = vmatmul.f32.gmra.mxu2 %v72_v3  ;;  %v1886_v6 = vpop.f32.mrf.mxu0  ;;  %v26_v3 = vld [vmem:[%s2232_s1 + $0x60] sm:$0xff] }
  0xaa   :  { %611 = vmatmul.f32.gmra.mxu1 %v71_v5  ;;  %v1953_v29 = vpop.f32.mrf.mxu2  ;;  %v37_v5 = vld [vmem:[%s2232_s1 + $0xb8] sm:$0xff] }
  0xac   :  { %705 = vmatmul.f32.gmra.mxu3 %v99_v12 }
  0xae   :  { %743 = vmatmul.f32.gmra.mxu0 %v74_v13  ;;  %v64_v13 = vld [vmem:[%s2232_s1 + $0x190] sm:$0xff] }
  0xaf   :  { %v1916_v18 = vpop.f32.mrf.mxu1 }
  0xb1   :  { %658 = vmatmul.f32.gmra.mxu2 %v85_v17  ;;  %v1928_v21 = vpop.f32.mrf.mxu0 }
  0xb2   :  { %614 = vmatmul.f32.gmra.mxu1 %v84_v8  ;;  %v39_v8 = vld [vmem:[%s2232_s1 + $0xc8] sm:$0xff] }
  0xb3   :  { %v515_v36 = vpop.f32.mrf.mxu3 }
  0xb4   :  { %708 = vmatmul.f32.gmra.mxu3 %v112_v22  ;;  %v49_v22 = vld [vmem:[%s2232_s1 + $0x118] sm:$0xff] }
  0xb6   :  { %746 = vmatmul.f32.gmra.mxu0 %v87_v16 }
  0xb7   :  { %v1941_v26 = vpop.f32.mrf.mxu1 }
  0xb9   :  { %661 = vmatmul.f32.gmra.mxu2 %v98_v25  ;;  %v389_v30 = vpop.f32.mrf.mxu0 }
  0xba   :  { %617 = vmatmul.f32.gmra.mxu1 %v97_v27  ;;  %v77_v27 = vld [vmem:[%s2232_s1 + $0x1f8] sm:$0xff] }
  0xbc   :  { %711 = vmatmul.f32.gmra.mxu3 %v125_v31  ;;  %v52_v31 = vld [vmem:[%s2232_s1 + $0x130] sm:$0xff] }
  0xbe   :  { %749 = vmatmul.f32.gmra.mxu0 %v100_v32 }
  0xbf   :  { %v424_v34 = vpop.f32.mrf.mxu1 }
  0xc0   :  { %v425_v37 = vadd.f32 %v424_v34, %v1851_v59  ;;  %v23_v59 = vld [vmem:[%s2232_s1 + $0x48] sm:$0xff]  ;;  %v62_v34 = vld [vmem:[%s2232_s1 + $0x180] sm:$0xff] }
  0xc1   :  { %664 = vmatmul.f32.gmra.mxu2 %v111_v33  ;;  %v518_v48 = vpop.f32.mrf.mxu3 }
  0xc2   :  { %620 = vmatmul.f32.gmra.mxu1 %v110_v35 }
  0xc3   :  { %v556_v41 = vpop.f32.mrf.mxu0 }
  0xc4   :  { %v468_v39 = vpop.f32.mrf.mxu2  ;;  %863 = vmatmul.f32.vlgmr.msra.gmra.mxu3 %v25_v38  ;;  %v90_v38 = vld [vmem:[%s2232_s1 + $0x260] sm:$0xff] }
  0xc5   :  { %v469_v40 = vadd.f32 %v468_v39, %v425_v37 }
  0xc6   :  { %752 = vmatmul.f32.gmra.mxu0 %v113_v42  ;;  %v65_v42 = vld [vmem:[%s2232_s1 + $0x198] sm:$0xff] }
  0xc7   :  { %v427_v44 = vpop.f32.mrf.mxu1  ;;  %v513_v45 = vadd.f32 %v512_v23, %v469_v40 }
  0xc8   :  { %v428_v49 = vadd.f32 %v427_v44, %v1886_v6 }
  0xc9   :  { %v1983_v47 = vadd.f32 %v556_v41, %v513_v45  ;;  %667 = vmatmul.f32.gmra.mxu2 %v124_v43  ;;  %v75_v45 = vld [vmem:[%s2232_s1 + $0x1e8] sm:$0xff] }
  0xca   :  { %623 = vmatmul.f32.gmra.mxu1 %v123_v46 }
  0xcb   :  { %v559_v53 = vpop.f32.mrf.mxu0  ;;  %v521_v61 = vpop.f32.mrf.mxu3 }
  0xcc   :  { %v471_v51 = vpop.f32.mrf.mxu2  ;;  %866 = vmatmul.f32.gmra.mxu3 %v38_v50  ;;  %v103_v50 = vld [vmem:[%s2232_s1 + $0x2c8] sm:$0xff] }
  0xcd   :  { %v472_v52 = vadd.f32 %v471_v51, %v428_v49 }
  0xce   :  { %755 = vmatmul.f32.gmra.mxu0 %v126_v55  ;;  %v78_v55 = vld [vmem:[%s2232_s1 + $0x200] sm:$0xff] }
  0xcf   :  { %v430_v57 = vpop.f32.mrf.mxu1  ;;  %v516_v58 = vadd.f32 %v515_v36, %v472_v52 }
  0xd0   :  { %v431_v62 = vadd.f32 %v430_v57, %v1928_v21 }
  0xd1   :  { %v1998_v60 = vadd.f32 %v559_v53, %v516_v58  ;;  %819 = vmatmul.f32.vlgmr.msrb.gmra.mxu2 %v24_v56  ;;  %v88_v58 = vld [vmem:[%s2232_s1 + $0x250] sm:$0xff] }
  0xd2   :  { %775 = vmatmul.f32.vlgmr.msrb.gmra.mxu1 %v23_v59 }
  0xd3   :  { %v562_v2 = vpop.f32.mrf.mxu0 }
  0xd4   :  { %v474_v0 = vpop.f32.mrf.mxu2  ;;  %869 = vmatmul.f32.gmra.mxu3 %v51_v63  ;;  %v116_v63 = vld [vmem:[%s2232_s1 + $0x330] sm:$0xff] }
  0xd5   :  { %v475_v1 = vadd.f32 %v474_v0, %v431_v62 }
  0xd6   :  { %1006 = vmatmul.msk.f32.vlgmr.msrb.gmra.mxu0 %vm335_vm0, %v26_v3  ;;  %v91_v3 = vld [vmem:[%s2232_s1 + $0x268] sm:$0xff] }
  0xd7   :  { %v433_v6 = vpop.f32.mrf.mxu1  ;;  %v519_v7 = vadd.f32 %v518_v48, %v475_v1  ;;  %v524_v12 = vpop.f32.mrf.mxu3 }
  0xd8   :  { %v434_v10 = vadd.f32 %v433_v6, %v389_v30 }
  0xd9   :  { %v2014_v11 = vadd.f32 %v562_v2, %v519_v7  ;;  %822 = vmatmul.f32.gmra.mxu2 %v37_v5  ;;  %v101_v7 = vld [vmem:[%s2232_s1 + $0x2b8] sm:$0xff] }
  0xda   :  { %778 = vmatmul.f32.gmra.mxu1 %v36_v9 }
  0xdb   :  { %v565_v17 = vpop.f32.mrf.mxu0 }
  0xdc   :  { %v477_v14 = vpop.f32.mrf.mxu2  ;;  %872 = vmatmul.f32.gmra.mxu3 %v64_v13  ;;  %v129_v13 = vld [vmem:[%s2232_s1 + $0x398] sm:$0xf] }
  0xdd   :  { %v478_v15 = vadd.f32 %v477_v14, %v434_v10 }
  0xde   :  { %1007 = vmatmul.msk.f32.gmra.mxu0 %vm335_vm0, %v39_v8  ;;  %v104_v8 = vld [vmem:[%s2232_s1 + $0x2d0] sm:$0xff] }
  0xdf   :  { %v436_v20 = vpop.f32.mrf.mxu1  ;;  %v522_v21 = vadd.f32 %v521_v61, %v478_v15  ;;  %v527_v25 = vpop.f32.mrf.mxu3 }
  0xe0   :  { %v437_v16 = vadd.f32 %v436_v20, %v1835_v54  ;;  %v63_v54 = vld [vmem:[%s2232_s1 + $0x188] sm:$0xff] }
  0xe1   :  { %v2030_v23 = vadd.f32 %v565_v17, %v522_v21  ;;  %825 = vmatmul.f32.gmra.mxu2 %v50_v19  ;;  %v114_v21 = vld [vmem:[%s2232_s1 + $0x320] sm:$0xff] }
  0xe2   :  { %781 = vmatmul.f32.gmra.mxu1 %v49_v22 }
  0xe3   :  { %v568_v30 = vpop.f32.mrf.mxu0 }
  0xe4   :  { %v480_v24 = vpop.f32.mrf.mxu2  ;;  %875 = vmatmul.f32.gmra.mxu3 %v77_v27  ;;  %v130_v27 = vld [vmem:[%s2232_s1 + $0x3a0] sm:$0xf] }
  0xe5   :  { %v481_v28 = vadd.f32 %v480_v24, %v437_v16 }
  0xe6   :  { %1008 = vmatmul.msk.f32.gmra.mxu0 %vm335_vm0, %v52_v31  ;;  %v117_v31 = vld [vmem:[%s2232_s1 + $0x338] sm:$0xff] }
  0xe7   :  { %v439_v32 = vpop.f32.mrf.mxu1  ;;  %v525_v33 = vadd.f32 %v524_v12, %v481_v28  ;;  %v530_v37 = vpop.f32.mrf.mxu3 }
  0xe8   :  { %v440_v35 = vadd.f32 %v439_v32, %v1880_v4  ;;  %v76_v4 = vld [vmem:[%s2232_s1 + $0x1f0] sm:$0xff] }
  0xe9   :  { %v2046_v36 = vadd.f32 %v568_v30, %v525_v33  ;;  %828 = vmatmul.f32.gmra.mxu2 %v63_v54  ;;  %v127_v33 = vld [vmem:[%s2232_s1 + $0x388] sm:$0xf] }
  0xea   :  { %784 = vmatmul.f32.gmra.mxu1 %v62_v34 }
  0xeb   :  { %v571_v41 = vpop.f32.mrf.mxu0 }
  0xec   :  { %v483_v39 = vpop.f32.mrf.mxu2  ;;  %878 = vmatmul.f32.gmra.mxu3 %v90_v38 }
  0xed   :  { %v484_v40 = vadd.f32 %v483_v39, %v440_v35 }
  0xee   :  { %1009 = vmatmul.msk.f32.gmra.mxu0 %vm335_vm0, %v65_v42 }
  0xef   :  { %v442_v43 = vpop.f32.mrf.mxu1  ;;  %v528_v44 = vadd.f32 %v527_v25, %v484_v40  ;;  %v533_v49 = vpop.f32.mrf.mxu3 }
  0xf0   :  { %v443_v46 = vadd.f32 %v442_v43, %v1916_v18  ;;  %v89_v18 = vld [vmem:[%s2232_s1 + $0x258] sm:$0xff] }
  0xf1   :  { %v2062_v48 = vadd.f32 %v571_v41, %v528_v44  ;;  %831 = vmatmul.f32.gmra.mxu2 %v76_v4 }
  0xf2   :  { %787 = vmatmul.f32.gmra.mxu1 %v75_v45 }
  0xf3   :  { %v574_v53 = vpop.f32.mrf.mxu0 }
  0xf4   :  { %v486_v51 = vpop.f32.mrf.mxu2  ;;  %881 = vmatmul.f32.gmra.mxu3 %v103_v50 }
  0xf5   :  { %v487_v52 = vadd.f32 %v486_v51, %v443_v46 }
  0xf6   :  { %1010 = vmatmul.msk.f32.gmra.mxu0 %vm335_vm0, %v78_v55 }
  0xf7   :  { %v445_v56 = vpop.f32.mrf.mxu1  ;;  %v531_v57 = vadd.f32 %v530_v37, %v487_v52  ;;  %v536_v62 = vpop.f32.mrf.mxu3 }
  0xf8   :  { %v446_v59 = vadd.f32 %v445_v56, %v1941_v26  ;;  %v102_v26 = vld [vmem:[%s2232_s1 + $0x2c0] sm:$0xff] }
  0xf9   :  { %v2078_v61 = vadd.f32 %v574_v53, %v531_v57  ;;  %834 = vmatmul.f32.gmra.mxu2 %v89_v18 }
  0xfa   :  { %790 = vmatmul.f32.gmra.mxu1 %v88_v58 }
  0xfb   :  { %v577_v2 = vpop.f32.mrf.mxu0 }
  0xfc   :  { %v489_v0 = vpop.f32.mrf.mxu2  ;;  %884 = vmatmul.f32.gmra.mxu3 %v116_v63 }
  0xfd   :  { %v490_v1 = vadd.f32 %v489_v0, %v446_v59 }
  0xfe   :  { %1011 = vmatmul.msk.f32.gmra.mxu0 %vm335_vm0, %v91_v3 }
  0xff   :  { %v448_v5 = vpop.f32.mrf.mxu1  ;;  %v534_v6 = vadd.f32 %v533_v49, %v490_v1  ;;  %v688_v12 = vpop.f32.mrf.mxu3 }
 0x100   :  { %v449_v9 = vadd.f32 %v448_v5, %v1953_v29  ;;  %v115_v29 = vld [vmem:[%s2232_s1 + $0x328] sm:$0xff] }
 0x101   :  { %v2094_v10 = vadd.f32 %v577_v2, %v534_v6  ;;  %837 = vmatmul.f32.gmra.mxu2 %v102_v26 }
 0x102   :  { %793 = vmatmul.f32.gmra.mxu1 %v101_v7 }
 0x103   :  { %v580_v17 = vpop.f32.mrf.mxu0 }
 0x104   :  { %v492_v14 = vpop.f32.mrf.mxu2  ;;  %887 = vmatmul.f32.gmra.mxu3 %v129_v13 }
 0x105   :  { %v493_v15 = vadd.f32 %v492_v14, %v449_v9 }
 0x106   :  { %1012 = vmatmul.msk.f32.gmra.mxu0 %vm335_vm0, %v104_v8 }
 0x107   :  { %v600_v19 = vpop.f32.mrf.mxu1  ;;  %v537_v20 = vadd.f32 %v536_v62, %v493_v15  ;;  %v691_v25 = vpop.f32.mrf.mxu3 }
 0x108   :  { %v601_v22 = vadd.f32 %v600_v19, %v1983_v47  ;;  %v128_v47 = vld [vmem:[%s2232_s1 + $0x390] sm:$0xf] }
 0x109   :  { %v2110_v16 = vadd.f32 %v580_v17, %v537_v20  ;;  %840 = vmatmul.f32.gmra.mxu2 %v115_v29 }
 0x10a   :  { %796 = vmatmul.f32.gmra.mxu1 %v114_v21 }
 0x10b   :  { %v732_v30 = vpop.f32.mrf.mxu0 }
 0x10c   :  { %v644_v24 = vpop.f32.mrf.mxu2  ;;  %1014 = vmatmul.msk.f32.vlgmr.msrb.gmra.mxu3 %vm335_vm0, %v130_v27 }
 0x10d   :  { %v645_v28 = vadd.f32 %v644_v24, %v601_v22 }
 0x10e   :  { %1013 = vmatmul.msk.f32.gmra.mxu0 %vm335_vm0, %v117_v31 }
 0x10f   :  { %v603_v54 = vpop.f32.mrf.mxu1  ;;  %v689_v32 = vadd.f32 %v688_v12, %v645_v28  ;;  %v694_v37 = vpop.f32.mrf.mxu3 }
 0x110   :  { %v604_v34 = vadd.f32 %v603_v54, %v1998_v60 }
 0x111   :  { %v2127_v35 = vadd.f32 %v732_v30, %v689_v32  ;;  %843 = vmatmul.f32.gmra.mxu2 %v128_v47 }
 0x112   :  { %799 = vmatmul.f32.gmra.mxu1 %v127_v33 }
 0x113   :  { %v735_v40 = vpop.f32.mrf.mxu0 }
 0x114   :  { %v647_v38 = vpop.f32.mrf.mxu2 }
 0x115   :  { %v648_v39 = vadd.f32 %v647_v38, %v604_v34 }
 0x117   :  { %v606_v41 = vpop.f32.mrf.mxu1  ;;  %v692_v42 = vadd.f32 %v691_v25, %v648_v39  ;;  %v697_v44 = vpop.f32.mrf.mxu3 }
 0x118   :  { %v607_v4 = vadd.f32 %v606_v41, %v2014_v11 }
 0x119   :  { %v2130_v43 = vadd.f32 %v735_v40, %v692_v42 }
 0x11b   :  { %v738_v60 = vpop.f32.mrf.mxu0 }
 0x11c   :  { %v650_v45 = vpop.f32.mrf.mxu2 }
 0x11d   :  { %v651_v46 = vadd.f32 %v650_v45, %v607_v4 }
 0x11f   :  { %v609_v49 = vpop.f32.mrf.mxu1  ;;  %v695_v50 = vadd.f32 %v694_v37, %v651_v46  ;;  %v700_v53 = vpop.f32.mrf.mxu3 }
 0x120   :  { %v610_v51 = vadd.f32 %v609_v49, %v2030_v23 }
 0x121   :  { %v2133_v52 = vadd.f32 %v738_v60, %v695_v50 }
 0x123   :  { %v741_v56 = vpop.f32.mrf.mxu0 }
 0x124   :  { %v653_v55 = vpop.f32.mrf.mxu2 }
 0x125   :  { %v654_v18 = vadd.f32 %v653_v55, %v610_v51 }
 0x127   :  { %v612_v57 = vpop.f32.mrf.mxu1  ;;  %v698_v58 = vadd.f32 %v697_v44, %v654_v18  ;;  %v703_v62 = vpop.f32.mrf.mxu3 }
 0x128   :  { %v613_v11 = vadd.f32 %v612_v57, %v2046_v36 }
 0x129   :  { %v2136_v59 = vadd.f32 %v741_v56, %v698_v58 }
 0x12b   :  { %v744_v1 = vpop.f32.mrf.mxu0 }
 0x12c   :  { %v656_v63 = vpop.f32.mrf.mxu2 }
 0x12d   :  { %v657_v0 = vadd.f32 %v656_v63, %v613_v11 }
 0x12f   :  { %v615_v2 = vpop.f32.mrf.mxu1  ;;  %v701_v3 = vadd.f32 %v700_v53, %v657_v0  ;;  %v706_v5 = vpop.f32.mrf.mxu3 }
 0x130   :  { %v616_v23 = vadd.f32 %v615_v2, %v2062_v48 }
 0x131   :  { %v2139_v26 = vadd.f32 %v744_v1, %v701_v3 }
 0x133   :  { %v747_v9 = vpop.f32.mrf.mxu0 }
 0x134   :  { %v659_v6 = vpop.f32.mrf.mxu2 }
 0x135   :  { %v660_v7 = vadd.f32 %v659_v6, %v616_v23 }
 0x137   :  { %v618_v12 = vpop.f32.mrf.mxu1  ;;  %v704_v13 = vadd.f32 %v703_v62, %v660_v7  ;;  %v709_v15 = vpop.f32.mrf.mxu3 }
 0x138   :  { %v619_v36 = vadd.f32 %v618_v12, %v2078_v61 }
 0x139   :  { %v2142_v14 = vadd.f32 %v747_v9, %v704_v13 }
 0x13b   :  { %v750_v29 = vpop.f32.mrf.mxu0 }
 0x13c   :  { %v662_v17 = vpop.f32.mrf.mxu2 }
 0x13d   :  { %v663_v8 = vadd.f32 %v662_v17, %v619_v36 }
 0x13f   :  { %v621_v19 = vpop.f32.mrf.mxu1  ;;  %v707_v20 = vadd.f32 %v706_v5, %v663_v8  ;;  %v712_v22 = vpop.f32.mrf.mxu3 }
 0x140   :  { %v622_v48 = vadd.f32 %v621_v19, %v2094_v10 }
 0x141   :  { %v2145_v21 = vadd.f32 %v750_v29, %v707_v20 }
 0x143   :  { %v753_v24 = vpop.f32.mrf.mxu0 }
 0x144   :  { %v665_v25 = vpop.f32.mrf.mxu2 }
 0x145   :  { %v666_v27 = vadd.f32 %v665_v25, %v622_v48 }
 0x147   :  { %v624_v28 = vpop.f32.mrf.mxu1  ;;  %v710_v30 = vadd.f32 %v709_v15, %v666_v27  ;;  %v864_v47 = vpop.f32.mrf.mxu3 }
 0x148   :  { %v625_v61 = vadd.f32 %v624_v28, %v2110_v16 }
 0x149   :  { %v2148_v31 = vadd.f32 %v753_v24, %v710_v30 }
 0x14b   :  { %v756_v33 = vpop.f32.mrf.mxu0 }
 0x14c   :  { %v668_v54 = vpop.f32.mrf.mxu2 }
 0x14d   :  { %v669_v32 = vadd.f32 %v668_v54, %v625_v61 }
 0x14f   :  { %v776_v34 = vpop.f32.mrf.mxu1  ;;  %v713_v37 = vadd.f32 %v712_v22, %v669_v32  ;;  %v867_v10 = vpop.f32.mrf.mxu3 }
 0x150   :  { %v777_v39 = vadd.f32 %v776_v34, %v2127_v35 }
 0x151   :  { %v2150_v38 = vadd.f32 %v756_v33, %v713_v37 }
 0x153   :  { %v908_v42 = vpop.f32.mrf.mxu0 }
 0x154   :  { %v820_v40 = vpop.f32.mrf.mxu2 }
 0x155   :  { %v821_v41 = vadd.f32 %v820_v40, %v777_v39 }
 0x157   :  { %v779_v4 = vpop.f32.mrf.mxu1  ;;  %v865_v44 = vadd.f32 %v864_v47, %v821_v41  ;;  %v870_v45 = vpop.f32.mrf.mxu3 }
 0x158   :  { %v780_v46 = vadd.f32 %v779_v4, %v2130_v43 }
 0x159   :  { %v909_v16 = vadd.f32 %v908_v42, %v865_v44 }
 0x15b   :  { %v936_v60 = vsel %vm935_vm1, %v909_v16, 0.0  ;;  %v911_v51 = vpop.f32.mrf.mxu0 }
 0x15c   :  { %v823_v49 = vpop.f32.mrf.mxu2  ;;  %937 = vadd.xlane.f32.xlu0 %v936_v60 }
 0x15d   :  { %v824_v50 = vadd.f32 %v823_v49, %v780_v46 }
 0x15f   :  { %v782_v53 = vpop.f32.mrf.mxu1  ;;  %v868_v55 = vadd.f32 %v867_v10, %v824_v50  ;;  %v873_v35 = vpop.f32.mrf.mxu3 }
 0x160   :  { %v783_v56 = vadd.f32 %v782_v53, %v2133_v52 }
 0x161   :  { %v912_v18 = vadd.f32 %v911_v51, %v868_v55 }
 0x163   :  { %v939_v57 = vsel %vm935_vm1, %v912_v18, 0.0  ;;  %v914_v62 = vpop.f32.mrf.mxu0  ;;  %v973_v18 = vld [vmem:[%s2233_s2] sm:$0xff] }
 0x164   :  { %v826_v58 = vpop.f32.mrf.mxu2  ;;  %940 = vadd.xlane.f32.xlu0 %v939_v57 }
 0x165   :  { %v827_v11 = vadd.f32 %v826_v58, %v783_v56 }
 0x167   :  { %v785_v63 = vpop.f32.mrf.mxu1  ;;  %v871_v43 = vadd.f32 %v870_v45, %v827_v11  ;;  %v876_v1 = vpop.f32.mrf.mxu3 }
 0x168   :  { %v786_v2 = vadd.f32 %v785_v63, %v2136_v59  ;;  %v975_v63 = vld [vmem:[%s2233_s2 + $0x10] sm:$0xff] }
 0x169   :  { %v915_v0 = vadd.f32 %v914_v62, %v871_v43 }
 0x16b   :  { %v942_v3 = vsel %vm935_vm1, %v915_v0, 0.0  ;;  %v917_v6 = vpop.f32.mrf.mxu0 }
 0x16c   :  { %v829_v23 = vpop.f32.mrf.mxu2  ;;  %943 = vadd.xlane.f32.xlu1 %v942_v3 }
 0x16d   :  { %v830_v5 = vadd.f32 %v829_v23, %v786_v2  ;;  %v976_v2 = vld [vmem:[%s2233_s2 + $0x18] sm:$0xff] }
 0x16f   :  { %v788_v7 = vpop.f32.mrf.mxu1  ;;  %v874_v52 = vadd.f32 %v873_v35, %v830_v5  ;;  %v879_v12 = vpop.f32.mrf.mxu3 }
 0x170   :  { %v789_v13 = vadd.f32 %v788_v7, %v2139_v26 }
 0x171   :  { %v918_v9 = vadd.f32 %v917_v6, %v874_v52  ;;  %v977_v6 = vld [vmem:[%s2233_s2 + $0x20] sm:$0xff] }
 0x173   :  { %v945_v36 = vsel %vm935_vm1, %v918_v9, 0.0  ;;  %v920_v8 = vpop.f32.mrf.mxu0 }
 0x174   :  { %v832_v15 = vpop.f32.mrf.mxu2  ;;  %946 = vadd.xlane.f32.xlu1 %v945_v36 }
 0x175   :  { %v833_v17 = vadd.f32 %v832_v15, %v789_v13 }
 0x177   :  { %v791_v29 = vpop.f32.mrf.mxu1  ;;  %v877_v59 = vadd.f32 %v876_v1, %v833_v17  ;;  %v882_v20 = vpop.f32.mrf.mxu3  ;;  %v979_v17 = vld [vmem:[%s2233_s2 + $0x30] sm:$0xff] }
 0x178   :  { %v792_v48 = vadd.f32 %v791_v29, %v2142_v14 }
 0x179   :  { %v921_v19 = vadd.f32 %v920_v8, %v877_v59 }
 0x17b   :  { %v948_v22 = vsel %vm935_vm1, %v921_v19, 0.0  ;;  %v923_v24 = vpop.f32.mrf.mxu0  ;;  %v980_v19 = vld [vmem:[%s2233_s2 + $0x38] sm:$0xff] }
 0x17c   :  { %v835_v25 = vpop.f32.mrf.mxu2  ;;  %949 = vadd.xlane.f32.xlu2 %v948_v22 }
 0x17d   :  { %v836_v27 = vadd.f32 %v835_v25, %v792_v48  ;;  %v981_v25 = vld [vmem:[%s2233_s2 + $0x40] sm:$0xf] }
 0x17f   :  { %v794_v28 = vpop.f32.mrf.mxu1  ;;  %v880_v26 = vadd.f32 %v879_v12, %v836_v27  ;;  %v885_v61 = vpop.f32.mrf.mxu3  ;;  %v978_v12 = vld [vmem:[%s2233_s2 + $0x28] sm:$0xff] }
 0x180   :  { %v795_v47 = vadd.f32 %v794_v28, %v2145_v21 }
 0x181   :  { %v924_v30 = vadd.f32 %v923_v24, %v880_v26 }
 0x183   :  { %v951_v54 = vsel %vm935_vm1, %v924_v30, 0.0  ;;  %v926_v34 = vpop.f32.mrf.mxu0 }
 0x184   :  { %v838_v32 = vpop.f32.mrf.mxu2  ;;  %952 = vadd.xlane.f32.xlu2 %v951_v54 }
 0x185   :  { %v839_v33 = vadd.f32 %v838_v32, %v795_v47 }
 0x187   :  { %v797_v37 = vpop.f32.mrf.mxu1  ;;  %v883_v14 = vadd.f32 %v882_v20, %v839_v33  ;;  %v888_v42 = vpop.f32.mrf.mxu3 }
 0x188   :  { %v798_v39 = vadd.f32 %v797_v37, %v2148_v31 }
 0x189   :  { %v927_v10 = vadd.f32 %v926_v34, %v883_v14 }
 0x18b   :  { %v954_v40 = vsel %vm935_vm1, %v927_v10, 0.0  ;;  %v929_v44 = vpop.f32.mrf.mxu0 }
 0x18c   :  { %v841_v41 = vpop.f32.mrf.mxu2  ;;  %955 = vadd.xlane.f32.xlu0 %v954_v40 }
 0x18d   :  { %v842_v4 = vadd.f32 %v841_v41, %v798_v39 }
 0x18f   :  { %v886_v16 = vadd.f32 %v885_v61, %v842_v4  ;;  %v800_v21 = vpop.f32.mrf.mxu1  ;;  %v932_v51 = vpop.f32.mrf.mxu3 }
 0x190   :  { %v801_v46 = vadd.f32 %v800_v21, %v2150_v38  ;;  %v974_v38 = vld [vmem:[%s2233_s2 + $0x8] sm:$0xff] }
 0x191   :  { %v930_v45 = vadd.f32 %v929_v44, %v886_v16 }
 0x193   :  { %v957_v60 = vsel %vm935_vm1, %v930_v45, 0.0 }
 0x194   :  { %v844_v49 = vpop.f32.mrf.mxu2  ;;  %958 = vadd.xlane.f32.xlu1 %v957_v60 }
 0x195   :  { %v845_v50 = vadd.f32 %v844_v49, %v801_v46 }
 0x197   :  { %v889_v53 = vadd.f32 %v888_v42, %v845_v50 }
 0x199   :  { %v933_v31 = vadd.f32 %v932_v51, %v889_v53 }
 0x19b   :  { %v961_v55 = vsel %vm960_vm2, %v933_v31, 0.0 }
 0x19c   :  { %962 = vadd.xlane.f32.xlu2 %v961_v55 }
 0x1cf   :  { %v938_v35 = vpop.xlane.xlu0 %937 }
 0x1d0   :  { %v964_v56 = vmul.f32 0.020408163, %v938_v35 }
 0x1d2   :  { %v982_v57 = vadd.f32 %v973_v18, %v964_v56 }
 0x1d4   :  { %992 = vst.msk [vmem:[%s2234_s3] sm:$0xff] %vm991_vm3, %v982_v57 }
 0x1d7   :  { %v941_v58 = vpop.xlane.xlu0 %940 }
 0x1d8   :  { %v965_v11 = vmul.f32 0.020408163, %v941_v58 }
 0x1da   :  { %v983_v62 = vadd.f32 %v974_v38, %v965_v11 }
 0x1dc   :  { %993 = vst.msk [vmem:[%s2234_s3 + $0x8] sm:$0xff] %vm991_vm3, %v983_v62 }
 0x1df   :  { %v944_v43 = vpop.xlane.xlu1 %943 }
 0x1e0   :  { %v966_v0 = vmul.f32 0.020408163, %v944_v43 }
 0x1e2   :  { %v984_v1 = vadd.f32 %v975_v63, %v966_v0 }
 0x1e4   :  { %994 = vst.msk [vmem:[%s2234_s3 + $0x10] sm:$0xff] %vm991_vm3, %v984_v1 }
 0x1e7   :  { %v947_v3 = vpop.xlane.xlu1 %946 }
 0x1e8   :  { %v967_v23 = vmul.f32 0.020408163, %v947_v3 }
 0x1ea   :  { %v985_v5 = vadd.f32 %v976_v2, %v967_v23 }
 0x1ec   :  { %995 = vst.msk [vmem:[%s2234_s3 + $0x18] sm:$0xff] %vm991_vm3, %v985_v5 }
 0x1ef   :  { %v950_v7 = vpop.xlane.xlu2 %949 }
 0x1f0   :  { %v968_v52 = vmul.f32 0.020408163, %v950_v7 }
 0x1f2   :  { %v986_v9 = vadd.f32 %v977_v6, %v968_v52 }
 0x1f4   :  { %996 = vst.msk [vmem:[%s2234_s3 + $0x20] sm:$0xff] %vm991_vm3, %v986_v9 }
 0x1f7   :  { %v953_v13 = vpop.xlane.xlu2 %952 }
 0x1f8   :  { %v969_v36 = vmul.f32 0.020408163, %v953_v13 }
 0x1fa   :  { %v987_v15 = vadd.f32 %v978_v12, %v969_v36 }
 0x1fc   :  { %997 = vst.msk [vmem:[%s2234_s3 + $0x28] sm:$0xff] %vm991_vm3, %v987_v15 }
 0x1ff   :  { %v956_v8 = vpop.xlane.xlu0 %955 }
 0x200   :  { %v970_v29 = vmul.f32 0.020408163, %v956_v8 }
 0x202   :  { %v988_v59 = vadd.f32 %v979_v17, %v970_v29 }
 0x204   :  { %998 = vst.msk [vmem:[%s2234_s3 + $0x30] sm:$0xff] %vm991_vm3, %v988_v59 }
 0x207   :  { %v959_v20 = vpop.xlane.xlu1 %958 }
 0x208   :  { %v971_v48 = vmul.f32 0.020408163, %v959_v20 }
 0x20a   :  { %v989_v22 = vadd.f32 %v980_v19, %v971_v48 }
 0x20c   :  { %999 = vst.msk [vmem:[%s2234_s3 + $0x38] sm:$0xff] %vm991_vm3, %v989_v22 }
 0x20f   :  { %v963_v27 = vpop.xlane.xlu2 %962 }
 0x210   :  { %v972_v24 = vmul.f32 0.020408163, %v963_v27 }
 0x212   :  { %v990_v28 = vadd.f32 %v981_v25, %v972_v24 }
 0x214   :  { %1001 = vst.msk [vmem:[%s2234_s3 + $0x40] sm:$0xf] %vm1000_vm4, %v990_v28 }

</bundles_post_ra>
